<compile_context>
chip_gen: v6e
topology: v6e:2x2x1
jax: 0.10.0
libtpu: 0.0.40
codegen_flags: <defaults>
</compile_context>

<pallas_src>
import functools

import numpy as np
import jax
import jax.numpy as jnp
from jax.experimental import pallas as pl
from jax.experimental.pallas import tpu as pltpu


def make_pe(max_len: int, d_model: int, dtype=jnp.float32):
    """Deterministic sinusoidal table, same math as the torch __init__."""
    position = jnp.arange(max_len, dtype=jnp.float32)[:, None]            # (L, 1)
    div_term = jnp.exp(
        jnp.arange(0, d_model, 2, dtype=jnp.float32)
        * (-jnp.log(jnp.float32(10000.0)) / d_model)
    )                                                                      # (D/2,)
    pe = jnp.zeros((max_len, d_model), dtype=jnp.float32)
    pe = pe.at[:, 0::2].set(jnp.sin(position * div_term))
    pe = pe.at[:, 1::2].set(jnp.cos(position * div_term))
    return pe.astype(dtype)


def _splitmix32(x):
    """Cheap 32-bit integer mix (VPU int ops only; no pltpu PRNG needed)."""
    x = (x ^ (x >> 16)) * jnp.uint32(0x7FEB352D)
    x = (x ^ (x >> 15)) * jnp.uint32(0x846CA68B)
    return x ^ (x >> 16)


def _pos_enc_kernel(seed_ref, x_ref, pe_ref, o_ref, *, p: float, batch: int,
                    block_rows: int):
    # x_ref / o_ref: (TS, B*D)   pe_ref: (TS, D)   seed_ref: (1,) in SMEM
    x = x_ref[...].astype(jnp.float32)
    pe = pe_ref[...].astype(jnp.float32)
    y = x + jnp.tile(pe, (1, batch))            # pe[s, d] broadcast over batch

    if p > 0.0:
        ts, bd = y.shape
        # Counter-based hash PRNG keyed on the GLOBAL element index, so the
        # stream is independent across grid tiles (no repeated masks).
        row = (jax.lax.broadcasted_iota(jnp.int32, (ts, bd), 0)
               + pl.program_id(0) * block_rows)
        col = jax.lax.broadcasted_iota(jnp.int32, (ts, bd), 1)
        idx = row.astype(jnp.uint32) * jnp.uint32(bd) + col.astype(jnp.uint32)
        key = _splitmix32(seed_ref[0].astype(jnp.uint32) ^ jnp.uint32(0x9E3779B9))
        bits = _splitmix32(idx * jnp.uint32(0x9E3779B1) + key)
        # top 24 bits -> exact uniform in [0, 1) without unsigned compares
        u = (bits >> 8).astype(jnp.int32).astype(jnp.float32) * jnp.float32(
            1.0 / (1 << 24))
        keep = (u >= jnp.float32(p)).astype(jnp.float32)        # P(drop) = p
        y = y * (keep * jnp.float32(1.0 / (1.0 - p)))           # inverted dropout

    o_ref[...] = y.astype(o_ref.dtype)


def positional_encoding(x, pe_full, *, dropout_p=0.1, training=True, seed=0):
    """x: (S, B, D); pe_full: (max_len, D).  Returns (S, B, D)."""
    S, B, D = x.shape
    p = float(dropout_p) if training else 0.0
    if not (0.0 <= p < 1.0):
        raise ValueError("dropout_p must be in [0, 1) for the kernel path")

    pe = pe_full[:S].astype(x.dtype)            # (S, D) -- pe[:x.size(0)]
    x2d = x.reshape(S, B * D)                   # free reshape -> lane-dense slab

    # Tile the sequence axis: ~4 MiB per block (safe under v7x's 64 MiB VMEM
    # with 2 inputs + 1 output double-buffered), sublane-aligned when tiled.
    bytes_per_row = B * D * np.dtype(x.dtype).itemsize
    target_bytes = 4 * 1024 * 1024
    ts = max(1, min(S, target_bytes // max(1, bytes_per_row)))
    if ts < S:
        ts = max(8, (ts // 8) * 8)
    grid = (pl.cdiv(S, ts),)

    kernel = functools.partial(_pos_enc_kernel, p=p, batch=B, block_rows=ts)
    seed_arr = jnp.array([seed], dtype=jnp.int32)

    out2d = pl.pallas_call(
        kernel,
        out_shape=jax.ShapeDtypeStruct((S, B * D), x.dtype),
        grid_spec=pltpu.PrefetchScalarGridSpec(
            num_scalar_prefetch=1,                      # seed lands in SMEM
            grid=grid,
            in_specs=[
                pl.BlockSpec((ts, B * D), lambda i, seed: (i, 0)),   # x slab
                pl.BlockSpec((ts, D), lambda i, seed: (i, 0)),       # pe rows
            ],
            out_specs=pl.BlockSpec((ts, B * D), lambda i, seed: (i, 0)),
        ),
        compiler_params=pltpu.CompilerParams(
            dimension_semantics=("parallel",),          # tiles are independent
        ),
    )(seed_arr, x2d, pe)

    return out2d.reshape(S, B, D)


if __name__ == "__main__":
    d_model = 32
    max_len = 64
    seq_len = 8
    batch = 2

    key = jax.random.PRNGKey(0)
    x = jax.random.normal(key, (seq_len, batch, d_model), dtype=jnp.float32)
    pe_full = make_pe(max_len, d_model)

    ref = np.asarray(x) + np.asarray(pe_full)[:seq_len][:, None, :]

    # Eval mode (dropout is identity) -- exact match against the reference.
    out_eval = positional_encoding(x, pe_full, dropout_p=0.1, training=False)
    jax.block_until_ready(out_eval)
    np.testing.assert_allclose(np.asarray(out_eval), ref, rtol=1e-6, atol=1e-6)

    # Training mode -- in-kernel hash-PRNG dropout.
    p = 0.1
    out_train = positional_encoding(x, pe_full, dropout_p=p, training=True,
                                    seed=0)
    jax.block_until_ready(out_train)
    out_np = np.asarray(out_train)
    assert out_np.shape == (seq_len, batch, d_model)
    assert np.all(np.isfinite(out_np))
    # Every element is either dropped (exactly 0) or scaled by 1/(1-p).
    scaled = ref / (1.0 - p)
    ok = (np.isclose(out_np, 0.0, atol=1e-12)
          | np.isclose(out_np, scaled, rtol=1e-5, atol=1e-6))
    assert np.all(ok)

    print("KERNEL_OK")
</pallas_src>

<mosaic_0001>
module attributes {stable_mosaic.version = 11 : i64} {
  func.func @_pos_enc_kernel(%arg0: i32, %arg1: memref<1xi32, #tpu.memory_space<smem>>, %arg2: memref<8x64xf32, #tpu.memory_space<vmem>>, %arg3: memref<8x32xf32, #tpu.memory_space<vmem>>, %arg4: memref<8x64xf32, #tpu.memory_space<vmem>>) attributes {dimension_semantics = [#tpu.dimension_semantics<parallel>], iteration_bounds = array<i64: 1>, scalar_prefetch = 1 : i64, scratch_operands = 0 : i64, tpu.core_type = #tpu.core_type<tc>, window_params = [{transform_indices = @transform_0, window_bounds = array<i64: 8, 64>}, {transform_indices = @transform_1, window_bounds = array<i64: 8, 32>}, {transform_indices = @transform_2, window_bounds = array<i64: 8, 64>}]} {
    %c0 = arith.constant 0 : index
    %c0_0 = arith.constant 0 : index
    %0 = vector.load %arg2[%c0, %c0_0] : memref<8x64xf32, #tpu.memory_space<vmem>>, vector<8x64xf32>
    %c0_1 = arith.constant 0 : index
    %c0_2 = arith.constant 0 : index
    %1 = vector.load %arg3[%c0_1, %c0_2] : memref<8x32xf32, #tpu.memory_space<vmem>>, vector<8x32xf32>
    %2 = tpu.concatenate %1, %1 in 1 : vector<8x32xf32>, vector<8x32xf32> -> vector<8x64xf32>
    %3 = arith.addf %0, %2 : vector<8x64xf32>
    %c0_3 = arith.constant 0 : index
    %c0_4 = arith.constant 0 : index
    %4 = vector.load %arg4[%c0_3, %c0_4] : memref<8x64xf32, #tpu.memory_space<vmem>>, vector<8x64xf32>
    tpu.vector_store %arg4[%c0_3, %c0_4], %3 {strides = array<i32>} : memref<8x64xf32, #tpu.memory_space<vmem>>, vector<8x64xf32>,
    return
  }
  func.func @transform_0(%arg0: i32, %arg1: memref<1xi32, #tpu.memory_space<smem>>) -> (i32, i32) {
    %c0_i32 = arith.constant 0 : i32
    %c0_i32_0 = arith.constant 0 : i32
    return %arg0, %c0_i32 : i32, i32
  }
  func.func @transform_1(%arg0: i32, %arg1: memref<1xi32, #tpu.memory_space<smem>>) -> (i32, i32) {
    %c0_i32 = arith.constant 0 : i32
    %c0_i32_0 = arith.constant 0 : i32
    return %arg0, %c0_i32 : i32, i32
  }
  func.func @transform_2(%arg0: i32, %arg1: memref<1xi32, #tpu.memory_space<smem>>) -> (i32, i32) {
    %c0_i32 = arith.constant 0 : i32
    %c0_i32_0 = arith.constant 0 : i32
    return %arg0, %c0_i32 : i32, i32
  }
}

</mosaic_0001>

<bundles_post_ra>
// kernel: tpu_custom_call.1
= control target key start
LH: loop header
LB: loop body
LE: loop exit
PB: predicated region body
PF: predicated region fallthrough
CT: control target
= control target key end

     0   :  { %9 = vsyncpa [#allocation5], 0  ;;  %s168_s0 = inlined_call_operand.<no memory space> [shape: s32[1], index: 0, kind: input, shape index: {}]   ;;  %s169_s1 = inlined_call_operand.hbm [shape: f32[8,64], index: 1, kind: input, shape index: {}]   ;;  %s170_s2 = inlined_call_operand.hbm [shape: f32[8,32], index: 2, kind: input, shape index: {}]   ;;  %s171_s3 = inlined_call_operand.hbm [shape: f32[8,64], index: 3, kind: output, shape index: {}]  }
   0x1   :  { %10 = vsyncpa [#allocation8], 0 }
   0x2   :  { %11 = vsyncpa [#allocation6], 0  ;;  %s135_s12 = smov [#allocation4]   ;;  %s136_s14 = smov [#allocation7]  }
   0x3   :  { %s18_s13 = sshll.u32 %s135_s12, 4  ;;  %s28_s15 = sshll.u32 %s136_s14, 4  ;;  %s19_s13 = int_to_ptr.vmem [resolvable:$true] %s18_s13  ;;  %s29_s15 = int_to_ptr.vmem [resolvable:$true] %s28_s15 }
   0x4   :  { %s77_s16 = scalar_lea.vmem %s19_s13, 128  ;;  %p82_p1 = scmp.lt.s32.totalorder %s19_s13, %s19_s13 }
   0x5   :  { %p78_p0 = scmp.ne.s32.totalorder %s19_s13, %s77_s16  ;;  %p83_p2 = scmp.lt.s32.totalorder %s77_s16, %s77_s16 }
   0x7   :  { %p84_p3 = por %p83_p2, %p82_p1 }
   0x9   :  { %p85_p4 = pnand %p84_p3, %p78_p0 }
   0xb   :  { %88 = shalt.err (!%p85_p4)
}
   0xc   :  { %21 = dma.hbm_to_vmem [thread:$0]  %s169_s1, 128, %s19_s13, [#allocation5]  }
   0xd   :  { %s97_s18 = scalar_lea.vmem %s29_s15, 128  ;;  %p102_p6 = scmp.lt.s32.totalorder %s29_s15, %s29_s15 }
   0xe   :  { %p98_p5 = scmp.ne.s32.totalorder %s29_s15, %s97_s18  ;;  %p103_p7 = scmp.lt.s32.totalorder %s97_s18, %s97_s18 }
  0x10   :  { %p104_p8 = por %p103_p7, %p102_p6 }
  0x12   :  { %p105_p9 = pnand %p104_p8, %p98_p5 }
  0x14   :  { %108 = shalt.err (!%p105_p9)
}
  0x15   :  { %31 = dma.hbm_to_vmem [thread:$0]  %s170_s2, 128, %s29_s15, [#allocation8]  }
  0x16   :  { %129 = dma.done.wait [#allocation5], 128  }
  0x17   :  { %130 = vsyncadd [#allocation5], 4294967168 }
  0x18   :  { %131 = dma.done.wait [#allocation8], 128  }
  0x19   :  { %132 = vsyncadd [#allocation8], 4294967168  ;;  %v39_v0 = vld [vmem:[#allocation7] sm:$0xff]  ;;  %s137_s21 = smov 32   ;;  %vm44_vm0 = vcmask 261120   ;;  %v38_v1 = vld [vmem:[#allocation4] sm:$0xff] }
  0x1a   :  { %41 = vrot.lane.b32.xlu0 %v39_v0, %s137_s21  ;;  %s138_s1 = smov [#allocation9]   ;;  %vm47_vm1 = vcmask 523264  }
  0x1b   :  { %s55_s22 = sshll.u32 %s138_s1, 4  ;;  %s56_s22 = int_to_ptr.vmem [resolvable:$true] %s55_s22 }
  0x1c   :  { %s109_s23 = scalar_lea.vmem %s56_s22, 128  ;;  %p114_p11 = scmp.lt.s32.totalorder %s56_s22, %s56_s22 }
  0x1d   :  { %p110_p10 = scmp.ne.s32.totalorder %s56_s22, %s109_s23  ;;  %p115_p12 = scmp.lt.s32.totalorder %s109_s23, %s109_s23 }
  0x1f   :  { %p116_p13 = por %p115_p12, %p114_p11 }
  0x21   :  { %p117_p0 = pnand %p116_p13, %p110_p10 }
  0x8c   :  { %v42_v2 = vpop.permute.xlu0 %41 }
  0x8d   :  { %v45_v3 = vsel %vm44_vm0, %v39_v0, %v42_v2 }
  0x8e   :  { %v46_v4 = vadd.f32 %v45_v3, %v38_v1 }
  0x90   :  { %48 = vst.msk [vmem:[#allocation9] sm:$0xff] %vm47_vm1, %v46_v4 }
  0x91   :  { %120 = shalt.err (!%p117_p0)
}
  0x92   :  { %58 = dma.vmem_to_hbm [thread:$0]  %s56_s22, 128, %s171_s3, [#allocation6]  }
  0x93   :  { %133 = dma.done.wait [#allocation6], 128  }
  0x94   :  { %134 = vsyncadd [#allocation6], 4294967168 }
  0x95   :  { %62 = vsyncpa [#allocation5], 1 }
  0x96   :  { %63 = vsyncpa [#allocation8], 1 }
  0x97   :  { %64 = vsyncpa [#allocation6], 1 }

</bundles_post_ra>
